<compile_context>
chip_gen: v7x
topology: tpu7x:2x2x1
jax: 0.10.0
libtpu: 0.0.40
codegen_flags: <defaults>
</compile_context>

<pallas_src>
import functools

import jax
import jax.numpy as jnp
from jax.experimental import pallas as pl
from jax.experimental.pallas import tpu as pltpu

TASKS = ("reconstruct", "predict")


def _fused_cross_stitch_kernel(p_ref, x_ref, or_ref, op_ref, *, num_stages):
    """Fused permute + all cross-stitch stages for one (batch, seq) block.

    p_ref : (S, C, 4) f32 VMEM -- per-stage, per-channel [a_rr, a_rp, a_pr, a_pp]
    x_ref : (B_BLK, L_BLK, C)  -- input block in the network's natural (B, L, C) layout
    o*_ref: (B_BLK, C, L_BLK)  -- channel-first outputs for (reconstruct, predict)
    """
    # Absorb x.permute(0, 2, 1): minor-dim transpose in VMEM, no extra HBM round trip.
    xt = jnp.transpose(x_ref[...].astype(jnp.float32), (0, 2, 1))  # (B_BLK, C, L_BLK)

    p = p_ref[...]  # (S, C, 4)
    xr = xt
    xp = xt
    for s in range(num_stages):  # static unroll over stages
        # TODO(synk): backbone['reconstruct'/'predict'].forward_stage are external
        # modules not defined in the source; identity stand-ins are used here
        # (predict's auxiliary `w` is dropped).
        a_rr = p[s, :, 0:1][None]  # (1, C, 1): broadcasts over batch rows and lanes
        a_rp = p[s, :, 1:2][None]
        a_pr = p[s, :, 2:3][None]
        a_pp = p[s, :, 3:4][None]
        xr, xp = (a_rr * xr + a_rp * xp, a_pr * xr + a_pp * xp)

    or_ref[...] = xr.astype(or_ref.dtype)
    op_ref[...] = xp.astype(op_ref.dtype)


def _largest_divisor_at_most(n, cap):
    cap = max(1, min(n, cap))
    for d in range(cap, 0, -1):
        if n % d == 0:
            return d
    return 1


def _pick_l_block(L, cap=2048):
    """Largest lane-dense (multiple-of-128) divisor of L up to `cap`; else full L."""
    if L <= cap or L % 128 != 0:
        return L
    d = cap - (cap % 128)
    while d >= 128:
        if L % d == 0:
            return d
        d -= 128
    return L


def _pick_b_block(B, l_blk, C, itemsize, budget_bytes=1 << 20):
    """Batch rows per block so one feature block is ~budget_bytes."""
    per_row = max(1, l_blk * C * itemsize)
    return _largest_divisor_at_most(B, max(1, budget_bytes // per_row))


def cross_stitch_fused(params_sc4, x_blc):
    """Apply the input permute + all cross-stitch stages in a single Pallas pass.

    params_sc4 : (S, C, 4) f32, columns [rr, rp, pr, pp] per stage / per channel
    x_blc      : (B, L, C) features in the network's input layout
    returns (out_reconstruct, out_predict), each (B, C, L) in x_blc.dtype
    """
    S, C, four = params_sc4.shape
    assert four == 4
    B, L, Cx = x_blc.shape
    assert Cx == C, f"channel mismatch: params C={C}, x C={Cx}"

    l_blk = _pick_l_block(L)
    b_blk = _pick_b_block(B, l_blk, C, jnp.dtype(x_blc.dtype).itemsize)
    grid = (B // b_blk, L // l_blk)

    out_shape = jax.ShapeDtypeStruct((B, C, L), x_blc.dtype)
    out_spec = pl.BlockSpec((b_blk, C, l_blk), lambda i, j: (i, 0, j))

    out_r, out_p = pl.pallas_call(
        functools.partial(_fused_cross_stitch_kernel, num_stages=S),
        out_shape=(out_shape, out_shape),
        grid_spec=pltpu.PrefetchScalarGridSpec(
            num_scalar_prefetch=0,
            grid=grid,
            in_specs=[
                pl.BlockSpec((S, C, 4), lambda i, j: (0, 0, 0)),       # params, resident
                pl.BlockSpec((b_blk, l_blk, C), lambda i, j: (i, j, 0)),
            ],
            out_specs=[out_spec, out_spec],
        ),
        compiler_params=pltpu.CompilerParams(
            dimension_semantics=("parallel", "parallel"),
        ),
    )(params_sc4, x_blc)
    return out_r, out_p


def make_cross_stitch_params(num_channels, alpha, beta, dtype=jnp.float32):
    """Deterministic init matching CrossStitchUnit.__init__ (fill alpha / beta).

    Returns (C, 4) with columns [a_rr, a_rp, a_pr, a_pp]:
      same-task weights = alpha, cross-task weights = beta.
    """
    col = jnp.array([alpha, beta, beta, alpha], dtype=dtype)  # rr, rp, pr, pp
    return jnp.broadcast_to(col[None, :], (num_channels, 4))


class CrossStitchNetworkPallas:
    """JAX/Pallas port of CrossStitchNetwork for tasks ('reconstruct', 'predict')."""

    def __init__(self, stages, channels, alpha, beta):
        self.tasks = TASKS
        self.stages = list(stages)
        self.cross_stitch_params = {
            stage: make_cross_stitch_params(channels[stage], alpha, beta)
            for stage in self.stages
        }
        # With identity backbone stand-ins, channel count must match across stages
        # so all stages can be fused into one kernel pass.
        chan_set = {int(channels[s]) for s in self.stages}
        assert len(chan_set) == 1, "stage fusion requires equal channels per stage"
        self._params_stacked = jnp.stack(
            [self.cross_stitch_params[s] for s in self.stages], axis=0
        )  # (S, C, 4)

    def __call__(self, x, tgt):
        # Original module: x = x.permute(0, 2, 1); then per stage the task backbones
        # (external) followed by the cross-stitch unit; then the task heads (external).
        # The permute and every cross-stitch stage are fused into ONE Pallas pass so
        # this memory-bound op makes a single HBM round trip.
        # TODO(synk): backbone['*'].forward_stage and heads are external nn.ModuleDicts
        # not defined in the source; identity stand-ins are used (head(x, tgt) -> x).
        out_r, out_p = cross_stitch_fused(self._params_stacked, x)
        return {"reconstruct": out_r, "predict": out_p}


def _cross_stitch_reference(params_c4, x_r, x_p):
    """Pure-JAX reference of one cross-stitch unit (for correctness check)."""
    a_rr = params_c4[:, 0][None, :, None]
    a_rp = params_c4[:, 1][None, :, None]
    a_pr = params_c4[:, 2][None, :, None]
    a_pp = params_c4[:, 3][None, :, None]
    return {
        "reconstruct": a_rr * x_r + a_rp * x_p,
        "predict": a_pr * x_r + a_pp * x_p,
    }


if __name__ == "__main__":
    B, L, C = 2, 128, 8          # batch, sequence length, channels
    alpha, beta = 0.9, 0.1
    stages = ["layer1", "layer2"]
    channels = {"layer1": C, "layer2": C}

    key = jax.random.PRNGKey(0)
    kx, kt = jax.random.split(key)
    x = jax.random.normal(kx, (B, L, C), dtype=jnp.float32)
    tgt = jax.random.normal(kt, (B, L, C), dtype=jnp.float32)

    net = CrossStitchNetworkPallas(stages, channels, alpha, beta)
    out = net(x, tgt)
    out = {k: jax.block_until_ready(v) for k, v in out.items()}

    # Correctness check of the fused Pallas pass vs. pure-JAX reference.
    x_cl = jnp.transpose(x, (0, 2, 1))
    ref = {"reconstruct": x_cl, "predict": x_cl}
    for stage in stages:
        ref = _cross_stitch_reference(
            net.cross_stitch_params[stage], ref["reconstruct"], ref["predict"]
        )
    for task in TASKS:
        assert out[task].shape == (B, C, L)
        err = float(jnp.max(jnp.abs(out[task] - ref[task])))
        assert err < 1e-5, f"mismatch for task {task}: {err}"

    print("KERNEL_OK")
</pallas_src>

<mosaic_0001>
module attributes {stable_mosaic.version = 11 : i64} {
  func.func @_fused_cross_stitch_kernel(%arg0: i32, %arg1: i32, %arg2: memref<2x8x4xf32, #tpu.memory_space<vmem>>, %arg3: memref<2x128x8xf32, #tpu.memory_space<vmem>>, %arg4: memref<2x8x128xf32, #tpu.memory_space<vmem>>, %arg5: memref<2x8x128xf32, #tpu.memory_space<vmem>>) attributes {dimension_semantics = [#tpu.dimension_semantics<parallel>, #tpu.dimension_semantics<parallel>], iteration_bounds = array<i64: 1, 1>, scalar_prefetch = 0 : i64, scratch_operands = 0 : i64, tpu.core_type = #tpu.core_type<tc>, window_params = [{pipeline_mode = #tpu.pipeline_mode<synchronous>, transform_indices = @transform_0, window_bounds = array<i64: 2, 8, 4>}, {transform_indices = @transform_1, window_bounds = array<i64: 2, 128, 8>}, {transform_indices = @transform_2, window_bounds = array<i64: 2, 8, 128>}, {transform_indices = @transform_3, window_bounds = array<i64: 2, 8, 128>}]} {
    %c0 = arith.constant 0 : index
    %c0_0 = arith.constant 0 : index
    %c0_1 = arith.constant 0 : index
    %0 = vector.load %arg3[%c0, %c0_0, %c0_1] : memref<2x128x8xf32, #tpu.memory_space<vmem>>, vector<2x128x8xf32>
    %1 = tpu.transpose %0, [0, 2, 1] : vector<2x128x8xf32> -> vector<2x8x128xf32>
    %c0_2 = arith.constant 0 : index
    %c0_3 = arith.constant 0 : index
    %c0_4 = arith.constant 0 : index
    %2 = vector.load %arg2[%c0_2, %c0_3, %c0_4] : memref<2x8x4xf32, #tpu.memory_space<vmem>>, vector<2x8x4xf32>
    %3 = vector.extract_strided_slice %2 {offsets = [0, 0, 0], sizes = [1, 8, 1], strides = [1, 1, 1]} : vector<2x8x4xf32> to vector<1x8x1xf32>
    %4 = vector.shape_cast %3 : vector<1x8x1xf32> to vector<8x1xf32>
    %5 = vector.shape_cast %4 : vector<8x1xf32> to vector<1x8x1xf32>
    %6 = vector.extract_strided_slice %2 {offsets = [0, 0, 1], sizes = [1, 8, 1], strides = [1, 1, 1]} : vector<2x8x4xf32> to vector<1x8x1xf32>
    %7 = vector.shape_cast %6 : vector<1x8x1xf32> to vector<8x1xf32>
    %8 = vector.shape_cast %7 : vector<8x1xf32> to vector<1x8x1xf32>
    %9 = vector.extract_strided_slice %2 {offsets = [0, 0, 2], sizes = [1, 8, 1], strides = [1, 1, 1]} : vector<2x8x4xf32> to vector<1x8x1xf32>
    %10 = vector.shape_cast %9 : vector<1x8x1xf32> to vector<8x1xf32>
    %11 = vector.shape_cast %10 : vector<8x1xf32> to vector<1x8x1xf32>
    %12 = vector.extract_strided_slice %2 {offsets = [0, 0, 3], sizes = [1, 8, 1], strides = [1, 1, 1]} : vector<2x8x4xf32> to vector<1x8x1xf32>
    %13 = vector.shape_cast %12 : vector<1x8x1xf32> to vector<8x1xf32>
    %14 = vector.shape_cast %13 : vector<8x1xf32> to vector<1x8x1xf32>
    %15 = vector.broadcast %5 : vector<1x8x1xf32> to vector<2x8x128xf32>
    %16 = arith.mulf %15, %1 : vector<2x8x128xf32>
    %17 = vector.broadcast %8 : vector<1x8x1xf32> to vector<2x8x128xf32>
    %18 = arith.mulf %17, %1 : vector<2x8x128xf32>
    %19 = arith.addf %16, %18 : vector<2x8x128xf32>
    %20 = vector.broadcast %11 : vector<1x8x1xf32> to vector<2x8x128xf32>
    %21 = arith.mulf %20, %1 : vector<2x8x128xf32>
    %22 = vector.broadcast %14 : vector<1x8x1xf32> to vector<2x8x128xf32>
    %23 = arith.mulf %22, %1 : vector<2x8x128xf32>
    %24 = arith.addf %21, %23 : vector<2x8x128xf32>
    %25 = vector.extract_strided_slice %2 {offsets = [1, 0, 0], sizes = [1, 8, 1], strides = [1, 1, 1]} : vector<2x8x4xf32> to vector<1x8x1xf32>
    %26 = vector.shape_cast %25 : vector<1x8x1xf32> to vector<8x1xf32>
    %27 = vector.shape_cast %26 : vector<8x1xf32> to vector<1x8x1xf32>
    %28 = vector.extract_strided_slice %2 {offsets = [1, 0, 1], sizes = [1, 8, 1], strides = [1, 1, 1]} : vector<2x8x4xf32> to vector<1x8x1xf32>
    %29 = vector.shape_cast %28 : vector<1x8x1xf32> to vector<8x1xf32>
    %30 = vector.shape_cast %29 : vector<8x1xf32> to vector<1x8x1xf32>
    %31 = vector.extract_strided_slice %2 {offsets = [1, 0, 2], sizes = [1, 8, 1], strides = [1, 1, 1]} : vector<2x8x4xf32> to vector<1x8x1xf32>
    %32 = vector.shape_cast %31 : vector<1x8x1xf32> to vector<8x1xf32>
    %33 = vector.shape_cast %32 : vector<8x1xf32> to vector<1x8x1xf32>
    %34 = vector.extract_strided_slice %2 {offsets = [1, 0, 3], sizes = [1, 8, 1], strides = [1, 1, 1]} : vector<2x8x4xf32> to vector<1x8x1xf32>
    %35 = vector.shape_cast %34 : vector<1x8x1xf32> to vector<8x1xf32>
    %36 = vector.shape_cast %35 : vector<8x1xf32> to vector<1x8x1xf32>
    %37 = vector.broadcast %27 : vector<1x8x1xf32> to vector<2x8x128xf32>
    %38 = arith.mulf %37, %19 : vector<2x8x128xf32>
    %39 = vector.broadcast %30 : vector<1x8x1xf32> to vector<2x8x128xf32>
    %40 = arith.mulf %39, %24 : vector<2x8x128xf32>
    %41 = arith.addf %38, %40 : vector<2x8x128xf32>
    %42 = vector.broadcast %33 : vector<1x8x1xf32> to vector<2x8x128xf32>
    %43 = arith.mulf %42, %19 : vector<2x8x128xf32>
    %44 = vector.broadcast %36 : vector<1x8x1xf32> to vector<2x8x128xf32>
    %45 = arith.mulf %44, %24 : vector<2x8x128xf32>
    %46 = arith.addf %43, %45 : vector<2x8x128xf32>
    %c0_5 = arith.constant 0 : index
    %c0_6 = arith.constant 0 : index
    %c0_7 = arith.constant 0 : index
    %47 = vector.load %arg4[%c0_5, %c0_6, %c0_7] : memref<2x8x128xf32, #tpu.memory_space<vmem>>, vector<2x8x128xf32>
    tpu.vector_store %arg4[%c0_5, %c0_6, %c0_7], %41 {strides = array<i32>} : memref<2x8x128xf32, #tpu.memory_space<vmem>>, vector<2x8x128xf32>,
    %c0_8 = arith.constant 0 : index
    %c0_9 = arith.constant 0 : index
    %c0_10 = arith.constant 0 : index
    %48 = vector.load %arg5[%c0_8, %c0_9, %c0_10] : memref<2x8x128xf32, #tpu.memory_space<vmem>>, vector<2x8x128xf32>
    tpu.vector_store %arg5[%c0_8, %c0_9, %c0_10], %46 {strides = array<i32>} : memref<2x8x128xf32, #tpu.memory_space<vmem>>, vector<2x8x128xf32>,
    return
  }
  func.func @transform_0(%arg0: i32, %arg1: i32) -> (i32, i32, i32) {
    %c0_i32 = arith.constant 0 : i32
    %c0_i32_0 = arith.constant 0 : i32
    %c0_i32_1 = arith.constant 0 : i32
    %c0_i32_2 = arith.constant 0 : i32
    return %c0_i32, %c0_i32_0, %c0_i32_1 : i32, i32, i32
  }
  func.func @transform_1(%arg0: i32, %arg1: i32) -> (i32, i32, i32) {
    %c0_i32 = arith.constant 0 : i32
    %c0_i32_0 = arith.constant 0 : i32
    return %arg0, %arg1, %c0_i32 : i32, i32, i32
  }
  func.func @transform_2(%arg0: i32, %arg1: i32) -> (i32, i32, i32) {
    %c0_i32 = arith.constant 0 : i32
    %c0_i32_0 = arith.constant 0 : i32
    return %arg0, %c0_i32, %arg1 : i32, i32, i32
  }
  func.func @transform_3(%arg0: i32, %arg1: i32) -> (i32, i32, i32) {
    %c0_i32 = arith.constant 0 : i32
    %c0_i32_0 = arith.constant 0 : i32
    return %arg0, %c0_i32, %arg1 : i32, i32, i32
  }
}

</mosaic_0001>

<bundles_post_ra>
// kernel: tpu_custom_call.1
= control target key start
LH: loop header
LB: loop body
LE: loop exit
PB: predicated region body
PF: predicated region fallthrough
CT: control target
= control target key end

     0   :  { %9 = vsyncpa [#allocation3], 0  ;;  %s432_s0 = inlined_call_operand.vmem [shape: f32[2,8,4], index: 0, kind: input, shape index: {}]   ;;  %s433_s1 = inlined_call_operand.vmem [shape: f32[2,128,8], index: 1, kind: input, shape index: {}]   ;;  %s434_s2 = inlined_call_operand.hbm [shape: f32[2,8,128], index: 2, kind: output, shape index: {0}]   ;;  %s435_s3 = inlined_call_operand.hbm [shape: f32[2,8,128], index: 3, kind: output, shape index: {1}]  }
   0x1   :  { %v31_v0 = vld [vmem:[%s433_s1 + $0x80] sm:$0xff]  ;;  %v32_v2 = vld [vmem:[%s433_s1 + $0x88] sm:$0xff]  ;;  %v33_v4 = vld [vmem:[%s433_s1 + $0x90] sm:$0xff] }
   0x2   :  { %v15_v1 = vld [vmem:[%s433_s1] sm:$0xff]  ;;  %79 = vxpose.xlu1.b32.start [1/16] (narrow) %v31_v0, 8  ;;  %v16_v3 = vld [vmem:[%s433_s1 + $0x8] sm:$0xff]  ;;  %v17_v5 = vld [vmem:[%s433_s1 + $0x10] sm:$0xff] }
   0x3   :  { %47 = vxpose.xlu0.b32.start [1/16] (narrow) %v15_v1, 8  ;;  %v34_v6 = vld [vmem:[%s433_s1 + $0x98] sm:$0xff] }
   0x4   :  { %v18_v7 = vld [vmem:[%s433_s1 + $0x18] sm:$0xff] }
   0x6   :  { %80 = vxpose.xlu1.b32.cont [2/16] (narrow) %v32_v2, 8 }
   0x7   :  { %48 = vxpose.xlu0.b32.cont [2/16] (narrow) %v16_v3, 8 }
   0xa   :  { %81 = vxpose.xlu1.b32.cont [3/16] (narrow) %v33_v4, 8 }
   0xb   :  { %49 = vxpose.xlu0.b32.cont [3/16] (narrow) %v17_v5, 8 }
   0xc   :  { %10 = vsyncpa [#allocation5], 0  ;;  %v35_v8 = vld [vmem:[%s433_s1 + $0xa0] sm:$0xff]  ;;  %v36_v10 = vld [vmem:[%s433_s1 + $0xa8] sm:$0xff]  ;;  %v272_v33 = vmov 1   ;;  %v273_v34 = vmov 2  }
   0xd   :  { %v19_v9 = vld [vmem:[%s433_s1 + $0x20] sm:$0xff]  ;;  %v20_v11 = vld [vmem:[%s433_s1 + $0x28] sm:$0xff]  ;;  %v37_v12 = vld [vmem:[%s433_s1 + $0xb0] sm:$0xff]  ;;  %v274_v35 = vmov 3   ;;  %v275_v36 = vmov 0  }
   0xe   :  { %82 = vxpose.xlu1.b32.cont [4/16] (narrow) %v34_v6, 8  ;;  %v21_v13 = vld [vmem:[%s433_s1 + $0x30] sm:$0xff]  ;;  %v38_v14 = vld [vmem:[%s433_s1 + $0xb8] sm:$0xff]  ;;  %v39_v16 = vld [vmem:[%s433_s1 + $0xc0] sm:$0xff] }
   0xf   :  { %50 = vxpose.xlu0.b32.cont [4/16] (narrow) %v18_v7, 8  ;;  %v22_v15 = vld [vmem:[%s433_s1 + $0x38] sm:$0xff]  ;;  %v23_v17 = vld [vmem:[%s433_s1 + $0x40] sm:$0xff]  ;;  %v40_v18 = vld [vmem:[%s433_s1 + $0xc8] sm:$0xff] }
  0x10   :  { %v24_v19 = vld [vmem:[%s433_s1 + $0x48] sm:$0xff]  ;;  %v41_v20 = vld [vmem:[%s433_s1 + $0xd0] sm:$0xff]  ;;  %v42_v22 = vld [vmem:[%s433_s1 + $0xd8] sm:$0xff] }
  0x11   :  { %v25_v21 = vld [vmem:[%s433_s1 + $0x50] sm:$0xff]  ;;  %v26_v23 = vld [vmem:[%s433_s1 + $0x58] sm:$0xff]  ;;  %v43_v24 = vld [vmem:[%s433_s1 + $0xe0] sm:$0xff] }
  0x12   :  { %83 = vxpose.xlu1.b32.cont [5/16] (narrow) %v35_v8, 8  ;;  %v27_v25 = vld [vmem:[%s433_s1 + $0x60] sm:$0xff]  ;;  %v44_v26 = vld [vmem:[%s433_s1 + $0xe8] sm:$0xff]  ;;  %v45_v28 = vld [vmem:[%s433_s1 + $0xf0] sm:$0xff] }
  0x13   :  { %51 = vxpose.xlu0.b32.cont [5/16] (narrow) %v19_v9, 8  ;;  %v28_v27 = vld [vmem:[%s433_s1 + $0x68] sm:$0xff]  ;;  %v29_v29 = vld [vmem:[%s433_s1 + $0x70] sm:$0xff]  ;;  %v46_v30 = vld [vmem:[%s433_s1 + $0xf8] sm:$0xff] }
  0x14   :  { %v30_v31 = vld [vmem:[%s433_s1 + $0x78] sm:$0xff]  ;;  %v111_v32 = vld [vmem:[%s432_s0] sm:$0xff]  ;;  %v112_v37 = vld [vmem:[%s432_s0 + $0x8] sm:$0xff]  ;;  %s276_s0 = smov [#allocation2]  }
  0x15   :  { %s180_s25 = sshll.u32 %s276_s0, 4  ;;  %s181_s25 = int_to_ptr.vmem [resolvable:$true] %s180_s25 }
  0x16   :  { %84 = vxpose.xlu1.b32.cont [6/16] (narrow) %v36_v10, 8  ;;  %s224_s26 = scalar_lea.vmem %s181_s25, 256  ;;  %p229_p1 = scmp.lt.s32.totalorder %s181_s25, %s181_s25 }
  0x17   :  { %52 = vxpose.xlu0.b32.cont [6/16] (narrow) %v20_v11, 8  ;;  %p225_p0 = scmp.ne.s32.totalorder %s181_s25, %s224_s26  ;;  %p230_p2 = scmp.lt.s32.totalorder %s224_s26, %s224_s26 }
  0x19   :  { %p231_p3 = por %p230_p2, %p229_p1 }
  0x1a   :  { %85 = vxpose.xlu1.b32.cont [7/16] (narrow) %v37_v12, 8 }
  0x1b   :  { %53 = vxpose.xlu0.b32.cont [7/16] (narrow) %v21_v13, 8  ;;  %p232_p4 = pnand %p231_p3, %p225_p0 }
  0x1e   :  { %86 = vxpose.xlu1.b32.cont [8/16] (narrow) %v38_v14, 8 }
  0x1f   :  { %54 = vxpose.xlu0.b32.cont [8/16] (narrow) %v22_v15, 8 }
  0x22   :  { %87 = vxpose.xlu1.b32.cont [9/16] (narrow) %v39_v16, 8 }
  0x23   :  { %55 = vxpose.xlu0.b32.cont [9/16] (narrow) %v23_v17, 8 }
  0x26   :  { %88 = vxpose.xlu1.b32.cont [10/16] (narrow) %v40_v18, 8 }
  0x27   :  { %56 = vxpose.xlu0.b32.cont [10/16] (narrow) %v24_v19, 8 }
  0x2a   :  { %89 = vxpose.xlu1.b32.cont [11/16] (narrow) %v41_v20, 8 }
  0x2b   :  { %57 = vxpose.xlu0.b32.cont [11/16] (narrow) %v25_v21, 8 }
  0x2e   :  { %90 = vxpose.xlu1.b32.cont [12/16] (narrow) %v42_v22, 8 }
  0x2f   :  { %58 = vxpose.xlu0.b32.cont [12/16] (narrow) %v26_v23, 8 }
  0x32   :  { %91 = vxpose.xlu1.b32.cont [13/16] (narrow) %v43_v24, 8 }
  0x33   :  { %59 = vxpose.xlu0.b32.cont [13/16] (narrow) %v27_v25, 8 }
  0x36   :  { %92 = vxpose.xlu1.b32.cont [14/16] (narrow) %v44_v26, 8 }
  0x37   :  { %60 = vxpose.xlu0.b32.cont [14/16] (narrow) %v28_v27, 8 }
  0x3a   :  { %93 = vxpose.xlu1.b32.cont [15/16] (narrow) %v45_v28, 8 }
  0x3b   :  { %61 = vxpose.xlu0.b32.cont [15/16] (narrow) %v29_v29, 8 }
  0x3e   :  { %94 = vxpose.xlu1.b32.end [16/16] (narrow) %v46_v30, 8 }
  0x3f   :  { %62 = vxpose.xlu0.b32.end [16/16] (narrow) %v30_v31, 8 }
  0x5c   :  { %216 = vset.pattern.permute.xlu1 %v272_v33 }
  0x5d   :  { %121 = vperm.xlu1 %216, %v111_v32  }
  0x61   :  { %217 = vset.pattern.permute.xlu1 %v273_v34 }
  0x62   :  { %129 = vperm.xlu1 %217, %v111_v32  }
  0x66   :  { %218 = vset.pattern.permute.xlu1 %v274_v35 }
  0x67   :  { %135 = vperm.xlu1 %218, %v111_v32  }
  0x68   :  { %215 = vset.pattern.permute.xlu0 %v275_v36 }
  0x69   :  { %115 = vperm.xlu0 %215, %v111_v32  }
  0x6b   :  { %219 = vset.pattern.permute.xlu1 %v275_v36 }
  0x6c   :  { %144 = vperm.xlu1 %219, %v112_v37  }
  0x6d   :  { %220 = vset.pattern.permute.xlu0 %v272_v33 }
  0x6e   :  { %150 = vperm.xlu0 %220, %v112_v37  }
  0x70   :  { %221 = vset.pattern.permute.xlu1 %v273_v34 }
  0x71   :  { %158 = vperm.xlu1 %221, %v112_v37  }
  0x72   :  { %223 = vset.pattern.permute.xlu0 %v274_v35 }
  0x75   :  { %222 = vset.pattern.permute.xlu1 %v274_v35 }
  0x76   :  { %164 = vperm.xlu1 %222, %v112_v37  }
  0x82   :  { %v95_v38 = vpop.trf.xlu1 }
  0x83   :  { %v63_v41 = vpop.trf.xlu0 }
  0xdc   :  { %v122_v39 = vpop.permute.xlu1 %121 }
  0xdd   :  { %v125_v46 = vmul.f32 %v122_v39, %v95_v38  ;;  %v124_v49 = vmul.f32 %v122_v39, %v63_v41 }
  0xe1   :  { %v130_v40 = vpop.permute.xlu1 %129 }
  0xe2   :  { %v132_v50 = vmul.f32 %v130_v40, %v63_v41  ;;  %v133_v51 = vmul.f32 %v130_v40, %v95_v38 }
  0xe6   :  { %v136_v42 = vpop.permute.xlu1 %135 }
  0xe7   :  { %v138_v43 = vmul.f32 %v136_v42, %v63_v41  ;;  %v139_v44 = vmul.f32 %v136_v42, %v95_v38 }
  0xe8   :  { %v116_v45 = vpop.permute.xlu0 %115 }
  0xe9   :  { %v118_v47 = vmul.f32 %v116_v45, %v63_v41  ;;  %v119_v48 = vmul.f32 %v116_v45, %v95_v38  ;;  %v140_v55 = vadd.f32 %v138_v43, %v132_v50  ;;  %v141_v56 = vadd.f32 %v139_v44, %v133_v51 }
  0xeb   :  { %v126_v52 = vadd.f32 %v124_v49, %v118_v47  ;;  %v127_v53 = vadd.f32 %v125_v46, %v119_v48  ;;  %v145_v54 = vpop.permute.xlu1 %144 }
  0xed   :  { %v147_v57 = vmul.f32 %v145_v54, %v126_v52  ;;  %v148_v58 = vmul.f32 %v145_v54, %v127_v53  ;;  %v151_v59 = vpop.permute.xlu0 %150 }
  0xee   :  { %v153_v60 = vmul.f32 %v151_v59, %v140_v55  ;;  %v154_v61 = vmul.f32 %v151_v59, %v141_v56 }
  0xf0   :  { %v155_v62 = vadd.f32 %v153_v60, %v147_v57  ;;  %v156_v63 = vadd.f32 %v154_v61, %v148_v58  ;;  %v159_v0 = vpop.permute.xlu1 %158 }
  0xf2   :  { %171 = vst [vmem:[#allocation2] sm:$0xff] %v155_v62  ;;  %172 = vst [vmem:[#allocation2 + $0x8] sm:$0xff] %v156_v63 }
  0xf3   :  { %235 = shalt.err (!%p232_p4)
}
  0xf4   :  { %s236_s29 = scalar_lea.hbm %s434_s2, 256 }
  0xf5   :  { %p237_p5 = scmp.ne.s32.totalorder %s434_s2, %s236_s29  ;;  %p240_p6 = scmp.lt.u32.totalorder %s236_s29, %s434_s2 }
  0xf7   :  { %p242_p7 = pnand %p240_p6, %p237_p5 }
  0xf9   :  { %245 = shalt.err (!%p242_p7)
}
  0xfa   :  { %s277_s7 = smov 128   ;;  %s278_s8 = smov 8   ;;  %v165_v1 = vpop.permute.xlu1 %164  ;;  %v161_v2 = vmul.f32 %v159_v0, %v126_v52  ;;  %v162_v3 = vmul.f32 %v159_v0, %v127_v53 }
  0xfb   :  { %186 = dma.vmem_to_hbm [thread:$0]  %s181_s25, 256, %s434_s2, [#allocation3], %s277_s7, %s277_s7, %s278_s8   ;;  %v167_v4 = vmul.f32 %v165_v1, %v140_v55  ;;  %v168_v5 = vmul.f32 %v165_v1, %v141_v56 }
  0xfc   :  { %s279_s11 = smov [#allocation4]  }
  0xfd   :  { %s192_s12 = sshll.u32 %s279_s11, 4  ;;  %v169_v6 = vadd.f32 %v167_v4, %v161_v2  ;;  %v170_v7 = vadd.f32 %v168_v5, %v162_v3  ;;  %s193_s12 = int_to_ptr.vmem [resolvable:$true] %s192_s12 }
  0xfe   :  { %s246_s13 = scalar_lea.vmem %s193_s12, 256  ;;  %p251_p9 = scmp.lt.s32.totalorder %s193_s12, %s193_s12 }
  0xff   :  { %173 = vst [vmem:[#allocation4] sm:$0xff] %v169_v6  ;;  %174 = vst [vmem:[#allocation4 + $0x8] sm:$0xff] %v170_v7  ;;  %p247_p8 = scmp.ne.s32.totalorder %s193_s12, %s246_s13  ;;  %p252_p10 = scmp.lt.s32.totalorder %s246_s13, %s246_s13 }
 0x101   :  { %p253_p11 = por %p252_p10, %p251_p9 }
 0x103   :  { %p254_p12 = pnand %p253_p11, %p247_p8 }
 0x105   :  { %257 = shalt.err (!%p254_p12)
}
 0x106   :  { %s258_s15 = scalar_lea.hbm %s435_s3, 256 }
 0x107   :  { %p259_p13 = scmp.ne.s32.totalorder %s435_s3, %s258_s15  ;;  %p262_p0 = scmp.lt.u32.totalorder %s258_s15, %s435_s3 }
 0x109   :  { %p264_p1 = pnand %p262_p0, %p259_p13 }
 0x10b   :  { %267 = shalt.err (!%p264_p1)
}
 0x10c   :  { %198 = dma.vmem_to_hbm [thread:$0]  %s193_s12, 256, %s435_s3, [#allocation5], %s277_s7, %s277_s7, %s278_s8  }
 0x10d   :  { %268 = dma.done.wait [#allocation3], 256  }
 0x10e   :  { %269 = vsyncadd [#allocation3], 4294967040 }
 0x10f   :  { %270 = dma.done.wait [#allocation5], 256  }
 0x110   :  { %271 = vsyncadd [#allocation5], 4294967040 }
 0x111   :  { %205 = vsyncpa [#allocation3], 1 }
 0x112   :  { %206 = vsyncpa [#allocation5], 1 }

</bundles_post_ra>
